<compile_context>
chip_gen: v7x
topology: tpu7x:2x2x1
jax: 0.10.0
libtpu: 0.0.40
codegen_flags: <defaults>
</compile_context>

<pallas_src>
import functools

import jax
import jax.numpy as jnp
from jax.experimental import pallas as pl
from jax.experimental.pallas import tpu as pltpu

_TILE_BYTES_BUDGET = 2 * 1024 * 1024   # per-input, per-buffer VMEM budget


def _choose_tile_h(H, W, itemsize, sub_mult):
    """Largest divisor of H that is a multiple of `sub_mult` and fits the
    per-tile VMEM budget; falls back to full H (full-dim blocks are always
    legal regardless of the (8, 128) tiling rule)."""
    max_rows = max(sub_mult, _TILE_BYTES_BUDGET // max(1, W * itemsize))
    if H <= max_rows:
        return H
    best = None
    d = sub_mult
    while d <= max_rows:
        if H % d == 0:
            best = d
        d += sub_mult
    return best if best is not None else H


def _tversky_partial_kernel(x_ref, t_ref, acc_ref, *, apply_sigmoid, fold_groups):
    """Accumulate per-sample partial sums of (v*t, v, t) into acc_ref,
    where v = tanh(0.5*x) when apply_sigmoid else x (sigmoid affine deferred
    to the scalar epilogue)."""
    i = pl.program_id(1)

    @pl.when(i == 0)
    def _():
        acc_ref[...] = jnp.zeros_like(acc_ref)

    x = x_ref[...].astype(jnp.float32)          # (tile_h, W) — channel 0 only
    t = t_ref[...].astype(jnp.float32)          # matches PyTorch target.float()
    v = jnp.tanh(0.5 * x) if apply_sigmoid else x

    tile_h, w = x.shape
    if fold_groups >= 1:
        # Sublane-group fold to (8, W): layout-preserving reshape -> pure VPU adds.
        def fold(a):
            return jnp.sum(a.reshape(fold_groups, 8, w), axis=0)
    else:
        # Rare path (H not a multiple of 8): single XLU sublane reduce to (1, W).
        def fold(a):
            return jnp.sum(a, axis=0, keepdims=True)

    acc_ref[0] += fold(v * t)    # -> sum(v * t)
    acc_ref[1] += fold(v)        # -> sum(v)
    acc_ref[2] += fold(t)        # -> sum(t)


def tversky_loss_binary(inputs, target, alpha=0.7, sigmoid=True):
    """Pallas implementation of TverskyLoss_Binary.forward(inputs, target)."""
    assert inputs.shape == target.shape, (
        'predict {} & target {} shape do not match'.format(inputs.shape, target.shape))
    beta = 1.0 - alpha

    N, C, H, W = inputs.shape

    # Keep native dtypes (no wrapper upcast / materialized copy); the kernel
    # casts to f32.  Bool masks are bitcast-cheaply widened to int8 only
    # because i1 VMEM refs are awkward in Mosaic (still 1 B/element).
    if target.dtype == jnp.bool_:
        target = target.astype(jnp.int8)

    # Sub-32-bit operands need a 32-row min sublane tile unless the block
    # spans the full H dimension.
    sub_mult = 8
    if inputs.dtype.itemsize < 4 or jnp.dtype(target.dtype).itemsize < 4:
        sub_mult = 32
    itemsize = max(inputs.dtype.itemsize, jnp.dtype(target.dtype).itemsize)
    tile_h = _choose_tile_h(H, W, itemsize, sub_mult)

    if tile_h % 8 == 0:
        acc_sub = 8
        fold_groups = tile_h // 8
    else:                       # tile_h == H and H % 8 != 0 (fallback path)
        acc_sub = 1
        fold_groups = 0

    kernel = functools.partial(
        _tversky_partial_kernel,
        apply_sigmoid=bool(sigmoid),
        fold_groups=fold_groups,
    )

    # Read NCHW directly; channel dim pinned to block 0 and squeezed.
    in_spec = pl.BlockSpec((None, None, tile_h, W), lambda n, i: (n, 0, i, 0))

    partials = pl.pallas_call(
        kernel,
        out_shape=jax.ShapeDtypeStruct((N, 3, acc_sub, W), jnp.float32),
        grid_spec=pltpu.PrefetchScalarGridSpec(
            num_scalar_prefetch=0,
            grid=(N, H // tile_h),
            in_specs=[in_spec, in_spec],
            out_specs=pl.BlockSpec((None, 3, acc_sub, W),
                                   lambda n, i: (n, 0, 0, 0)),
        ),
        compiler_params=pltpu.CompilerParams(
            dimension_semantics=("parallel", "arbitrary"),
            vmem_limit_bytes=32 * 1024 * 1024),
    )(inputs, target)

    # Tiny epilogue: combine per-sample partials and apply the Tversky formula.
    sums = jnp.sum(partials, axis=(0, 2, 3))   # (3,) = [sum(v*t), sum(v), sum(t)]
    sum_vt, sum_v, sum_t = sums[0], sums[1], sums[2]
    if sigmoid:
        count = float(N * H * W)               # channel-0 element count
        tp = 0.5 * sum_vt + 0.5 * sum_t        # sum(sigmoid(x) * t)
        sum_s = 0.5 * sum_v + 0.5 * count      # sum(sigmoid(x))
    else:
        tp = sum_vt
        sum_s = sum_v
    fp = sum_s - tp                            # sum((1 - t) * s)
    fn = sum_t - tp                            # sum(t * (1 - s))
    smooth = 1.0
    return 1.0 - (tp + smooth) / (tp + alpha * fp + beta * fn + smooth)


def _reference(inputs, target, alpha=0.7, sigmoid=True):
    score = inputs.astype(jnp.float32)[:, 0]
    if sigmoid:
        score = jax.nn.sigmoid(score)
    tgt = target.astype(jnp.float32)[:, 0]
    smooth = 1.0
    tp = jnp.sum(score * tgt)
    fp = jnp.sum((1.0 - tgt) * score)
    fn = jnp.sum(tgt * (1.0 - score))
    return 1.0 - (tp + smooth) / (tp + alpha * fp + (1.0 - alpha) * fn + smooth)


if __name__ == "__main__":
    key = jax.random.PRNGKey(0)
    k1, k2 = jax.random.split(key)
    N, C, H, W = 2, 4, 16, 16
    inputs = jax.random.normal(k1, (N, C, H, W), dtype=jnp.float32)
    target = (jax.random.uniform(k2, (N, C, H, W)) > 0.5).astype(jnp.float32)

    # sigmoid=True path (default forward)
    loss = tversky_loss_binary(inputs, target, alpha=0.7, sigmoid=True)
    loss = jax.block_until_ready(loss)
    ref = _reference(inputs, target, alpha=0.7, sigmoid=True)
    assert jnp.allclose(loss, ref, rtol=1e-5, atol=1e-5), (loss, ref)

    # sigmoid=False path (probabilities passed in directly)
    probs = jax.nn.sigmoid(inputs)
    loss2 = tversky_loss_binary(probs, target, alpha=0.7, sigmoid=False)
    loss2 = jax.block_until_ready(loss2)
    ref2 = _reference(probs, target, alpha=0.7, sigmoid=False)
    assert jnp.allclose(loss2, ref2, rtol=1e-5, atol=1e-5), (loss2, ref2)

    print("KERNEL_OK")
</pallas_src>

<mosaic_0001>
module attributes {stable_mosaic.version = 11 : i64} {
  func.func @_tversky_partial_kernel(%arg0: i32, %arg1: i32, %arg2: memref<1x1x16x16xf32, #tpu.memory_space<vmem>>, %arg3: memref<1x1x16x16xf32, #tpu.memory_space<vmem>>, %arg4: memref<1x3x8x16xf32, #tpu.memory_space<vmem>>) attributes {dimension_semantics = [#tpu.dimension_semantics<parallel>, #tpu.dimension_semantics<arbitrary>], iteration_bounds = array<i64: 2, 1>, scalar_prefetch = 0 : i64, scratch_operands = 0 : i64, tpu.core_type = #tpu.core_type<tc>, window_params = [{transform_indices = @transform_0, window_bounds = array<i64: 1, 1, 16, 16>}, {transform_indices = @transform_1, window_bounds = array<i64: 1, 1, 16, 16>}, {transform_indices = @transform_2, window_bounds = array<i64: 1, 3, 8, 16>}]} {
    %c0_i32 = arith.constant 0 : i32
    %0 = arith.cmpi eq, %arg1, %c0_i32 : i32
    %1 = arith.extui %0 : i1 to i32
    %c0_i32_0 = arith.constant 0 : i32
    %2 = arith.cmpi ne, %1, %c0_i32_0 : i32
    scf.if %2 {
      %cst_33 = arith.constant 0.000000e+00 : f32
      %35 = vector.broadcast %cst_33 : f32 to vector<3x8x16xf32>
      %c0_34 = arith.constant 0 : index
      %c0_35 = arith.constant 0 : index
      %c0_36 = arith.constant 0 : index
      %c0_37 = arith.constant 0 : index
      %36 = vector.load %arg4[%c0_34, %c0_35, %c0_36, %c0_37] : memref<1x3x8x16xf32, #tpu.memory_space<vmem>>, vector<1x3x8x16xf32>
      %37 = vector.shape_cast %36 : vector<1x3x8x16xf32> to vector<3x8x16xf32>
      %38 = vector.shape_cast %35 : vector<3x8x16xf32> to vector<1x3x8x16xf32>
      tpu.vector_store %arg4[%c0_34, %c0_35, %c0_36, %c0_37], %38 {strides = array<i32>} : memref<1x3x8x16xf32, #tpu.memory_space<vmem>>, vector<1x3x8x16xf32>,
    } else {
    }
    %c0 = arith.constant 0 : index
    %c0_1 = arith.constant 0 : index
    %c0_2 = arith.constant 0 : index
    %c0_3 = arith.constant 0 : index
    %3 = vector.load %arg2[%c0, %c0_1, %c0_2, %c0_3] : memref<1x1x16x16xf32, #tpu.memory_space<vmem>>, vector<1x1x16x16xf32>
    %4 = vector.shape_cast %3 : vector<1x1x16x16xf32> to vector<16x16xf32>
    %c0_4 = arith.constant 0 : index
    %c0_5 = arith.constant 0 : index
    %c0_6 = arith.constant 0 : index
    %c0_7 = arith.constant 0 : index
    %5 = vector.load %arg3[%c0_4, %c0_5, %c0_6, %c0_7] : memref<1x1x16x16xf32, #tpu.memory_space<vmem>>, vector<1x1x16x16xf32>
    %6 = vector.shape_cast %5 : vector<1x1x16x16xf32> to vector<16x16xf32>
    %cst = arith.constant 5.000000e-01 : f32
    %7 = vector.broadcast %cst : f32 to vector<16x16xf32>
    %8 = arith.mulf %7, %4 : vector<16x16xf32>
    %9 = math.tanh %8 : vector<16x16xf32>
    %c0_8 = arith.constant 0 : index
    %c0_9 = arith.constant 0 : index
    %c0_10 = arith.constant 0 : index
    %c0_11 = arith.constant 0 : index
    %10 = vector.load %arg4[%c0_8, %c0_9, %c0_10, %c0_11] : memref<1x3x8x16xf32, #tpu.memory_space<vmem>>, vector<1x1x8x16xf32>
    %11 = vector.shape_cast %10 : vector<1x1x8x16xf32> to vector<8x16xf32>
    %12 = arith.mulf %9, %6 : vector<16x16xf32>
    %13 = vector.shape_cast %12 : vector<16x16xf32> to vector<2x8x16xf32>
    %cst_12 = arith.constant dense<0.000000e+00> : vector<8x16xf32>
    %14 = vector.multi_reduction <add>, %13, %cst_12 [0] : vector<2x8x16xf32> to vector<8x16xf32>
    %15 = arith.addf %11, %14 : vector<8x16xf32>
    %c0_13 = arith.constant 0 : index
    %c0_14 = arith.constant 0 : index
    %c0_15 = arith.constant 0 : index
    %c0_16 = arith.constant 0 : index
    %16 = vector.load %arg4[%c0_13, %c0_14, %c0_15, %c0_16] : memref<1x3x8x16xf32, #tpu.memory_space<vmem>>, vector<1x1x8x16xf32>
    %17 = vector.shape_cast %16 : vector<1x1x8x16xf32> to vector<8x16xf32>
    %18 = vector.shape_cast %15 : vector<8x16xf32> to vector<1x1x8x16xf32>
    tpu.vector_store %arg4[%c0_13, %c0_14, %c0_15, %c0_16], %18 {strides = array<i32>} : memref<1x3x8x16xf32, #tpu.memory_space<vmem>>, vector<1x1x8x16xf32>,
    %c0_17 = arith.constant 0 : index
    %c1 = arith.constant 1 : index
    %c0_18 = arith.constant 0 : index
    %c0_19 = arith.constant 0 : index
    %19 = vector.load %arg4[%c0_17, %c1, %c0_18, %c0_19] : memref<1x3x8x16xf32, #tpu.memory_space<vmem>>, vector<1x1x8x16xf32>
    %20 = vector.shape_cast %19 : vector<1x1x8x16xf32> to vector<8x16xf32>
    %21 = vector.shape_cast %9 : vector<16x16xf32> to vector<2x8x16xf32>
    %cst_20 = arith.constant dense<0.000000e+00> : vector<8x16xf32>
    %22 = vector.multi_reduction <add>, %21, %cst_20 [0] : vector<2x8x16xf32> to vector<8x16xf32>
    %23 = arith.addf %20, %22 : vector<8x16xf32>
    %c0_21 = arith.constant 0 : index
    %c1_22 = arith.constant 1 : index
    %c0_23 = arith.constant 0 : index
    %c0_24 = arith.constant 0 : index
    %24 = vector.load %arg4[%c0_21, %c1_22, %c0_23, %c0_24] : memref<1x3x8x16xf32, #tpu.memory_space<vmem>>, vector<1x1x8x16xf32>
    %25 = vector.shape_cast %24 : vector<1x1x8x16xf32> to vector<8x16xf32>
    %26 = vector.shape_cast %23 : vector<8x16xf32> to vector<1x1x8x16xf32>
    tpu.vector_store %arg4[%c0_21, %c1_22, %c0_23, %c0_24], %26 {strides = array<i32>} : memref<1x3x8x16xf32, #tpu.memory_space<vmem>>, vector<1x1x8x16xf32>,
    %c0_25 = arith.constant 0 : index
    %c2 = arith.constant 2 : index
    %c0_26 = arith.constant 0 : index
    %c0_27 = arith.constant 0 : index
    %27 = vector.load %arg4[%c0_25, %c2, %c0_26, %c0_27] : memref<1x3x8x16xf32, #tpu.memory_space<vmem>>, vector<1x1x8x16xf32>
    %28 = vector.shape_cast %27 : vector<1x1x8x16xf32> to vector<8x16xf32>
    %29 = vector.shape_cast %6 : vector<16x16xf32> to vector<2x8x16xf32>
    %cst_28 = arith.constant dense<0.000000e+00> : vector<8x16xf32>
    %30 = vector.multi_reduction <add>, %29, %cst_28 [0] : vector<2x8x16xf32> to vector<8x16xf32>
    %31 = arith.addf %28, %30 : vector<8x16xf32>
    %c0_29 = arith.constant 0 : index
    %c2_30 = arith.constant 2 : index
    %c0_31 = arith.constant 0 : index
    %c0_32 = arith.constant 0 : index
    %32 = vector.load %arg4[%c0_29, %c2_30, %c0_31, %c0_32] : memref<1x3x8x16xf32, #tpu.memory_space<vmem>>, vector<1x1x8x16xf32>
    %33 = vector.shape_cast %32 : vector<1x1x8x16xf32> to vector<8x16xf32>
    %34 = vector.shape_cast %31 : vector<8x16xf32> to vector<1x1x8x16xf32>
    tpu.vector_store %arg4[%c0_29, %c2_30, %c0_31, %c0_32], %34 {strides = array<i32>} : memref<1x3x8x16xf32, #tpu.memory_space<vmem>>, vector<1x1x8x16xf32>,
    return
  }
  func.func @transform_0(%arg0: i32, %arg1: i32) -> (i32, i32, i32, i32) {
    %c0_i32 = arith.constant 0 : i32
    %c0_i32_0 = arith.constant 0 : i32
    %c0_i32_1 = arith.constant 0 : i32
    return %arg0, %c0_i32, %arg1, %c0_i32_0 : i32, i32, i32, i32
  }
  func.func @transform_1(%arg0: i32, %arg1: i32) -> (i32, i32, i32, i32) {
    %c0_i32 = arith.constant 0 : i32
    %c0_i32_0 = arith.constant 0 : i32
    %c0_i32_1 = arith.constant 0 : i32
    return %arg0, %c0_i32, %arg1, %c0_i32_0 : i32, i32, i32, i32
  }
  func.func @transform_2(%arg0: i32, %arg1: i32) -> (i32, i32, i32, i32) {
    %c0_i32 = arith.constant 0 : i32
    %c0_i32_0 = arith.constant 0 : i32
    %c0_i32_1 = arith.constant 0 : i32
    %c0_i32_2 = arith.constant 0 : i32
    return %arg0, %c0_i32, %c0_i32_0, %c0_i32_1 : i32, i32, i32, i32
  }
}

</mosaic_0001>

<bundles_post_ra>
// kernel: tpu_custom_call.1
= control target key start
LH: loop header
LB: loop body
LE: loop exit
PB: predicated region body
PF: predicated region fallthrough
CT: control target
= control target key end

     0   :  { %7 = vsyncpa [#allocation3], 0  ;;  %s919_s0 = inlined_call_operand.hbm [shape: f32[2,4,16,16], index: 0, kind: input, shape index: {}]   ;;  %s920_s1 = inlined_call_operand.hbm [shape: f32[2,4,16,16], index: 1, kind: input, shape index: {}]   ;;  %s921_s2 = inlined_call_operand.hbm [shape: f32[2,3,8,16], index: 2, kind: output, shape index: {}]  }
   0x1   :  { %9 = vsyncpa [#allocation3 + $0x1], 0 }
   0x2   :  { %10 = vsyncpa [#allocation6], 0 }
   0x3   :  { %12 = vsyncpa [#allocation6 + $0x1], 0 }
   0x4   :  { %13 = vsyncpa [#allocation4], 0 }
   0x5   :  { %15 = vsyncpa [#allocation4 + $0x1], 0  ;;  %s658_s9 = smov 0   ;;  %s660_s10 = smov 0  }
   0x6   :  { %s662_s11 = smov 0   ;;  %s664_s12 = smov 0  }
   0x7   :  { %s666_s13 = smov 0   ;;  %s668_s14 = smov 0  }
   0x8 LB: > { %s387_s15 = sadd.s32 4294967295, %s633_s14   ;;  %s388_s16 = sadd.s32 4294967294, %s633_s14   ;;  %s633_s14 = sphi %s668_s14, %s21_s14   ;;  %s629_s13 = sphi %s666_s13, %s939_s13   ;;  %s625_s12 = sphi %s664_s12, %s938_s12   ;;  %s621_s11 = sphi %s662_s11, %s937_s11   ;;  %s617_s10 = sphi %s660_s10, %s936_s10   ;;  %s613_s9 = sphi %s658_s9, %s935_s9  }
   0x9   : > { %s33_s17 = sadd.s32 1, %s629_s13  ;;  %s42_s18 = sadd.s32 1, %s621_s11 }
   0xa   : > { %p35_p0 = scmp.ge.s32.totalorder %s33_s17, 2  ;;  %p49_p1 = scmp.ne.s32.totalorder %s621_s11, %s617_s10 }
   0xb   : > { %p50_p2 = scmp.eq.s32.totalorder %s633_s14, 0  ;;  %p55_p3 = scmp.ne.s32.totalorder %s617_s10, %s613_s9 }
   0xc   : > { %s941_s17 = smov (%p35_p0, %s33_s17), 0  ;;  %p56_p5 = scmp.eq.s32.totalorder %s387_s15, 0 }
   0xd   : > { %p699_p4 = por %p50_p2, %p49_p1  ;;  %s37_s20 = ssub.s32 %s629_s13, %s941_s17 }
   0xe   : > { %p107_p6 = scmp.eq.s32.totalorder %s387_s15, 1  ;;  %p40_p7 = scmp.eq.s32.totalorder %s37_s20, 0 }
   0xf   : > { %p705_p8 = por %p56_p5, %p55_p3  ;;  %p113_p10 = scmp.eq.s32.totalorder %s388_s16, 1 }
  0x10   : > { %p709_p9 = por %p107_p6, %p49_p1  ;;  %p428_p13 = scmp.lt.s32.totalorder %s633_s14, 2 }
  0x11   : > { %s925_s21 = scalar_select %p705_p8, 1, 0 }
  0x12   : > { %s926_s22 = scalar_select %p709_p9, 1, 0 }
  0x13   : > { %s714_s23 = scalar_select %p40_p7, %s621_s11, %s42_s18  }
  0x14   : > { %p716_p11 = por %p113_p10, %p55_p3  ;;  %s723_s25 = sand.u32 1, %s621_s11  }
  0x15   : > { %s391_s26 = sshll.u32 %s723_s25, 4  ;;  %s407_s27 = sshll.u32 %s629_s13, 10 }
  0x16   : > { %s927_s24 = scalar_select %p716_p11, 1, 0 }
  0x17   : > { %s732_s30 = scalar_lea.hbm %s919_s0, %s407_s27  ;;  %s137_s3 = scalar_lea.vmem [#allocation2], %s391_s26 }
  0x18   : > { %s146_s4 = sshll.u32 %s137_s3, 4  ;;  %p740_p0 = pnand %p428_p13, %p699_p4  ;;  %s736_s4 = int_to_ptr.vmem [resolvable:$true] %s146_s4 }
  0x19   : > { %s134_s6 = scalar_lea.sflag [#allocation3], %s723_s25  ;;  %s487_s7 = scalar_lea.hbm %s732_s30, 256 }
  0x1a   : > { %p488_p2 = scmp.ne.s32.totalorder %s732_s30, %s487_s7  ;;  %p489_p3 = pneg %p740_p0 }
  0x1b   : > { %s492_s16 = scalar_lea.hbm %s919_s0, 2048  ;;  %p493_p4 = scmp.lt.u32.totalorder %s732_s30, %s919_s0 }
  0x1c   : > { %p490_p5 = pnand %p489_p3, %p488_p2  ;;  %p494_p7 = scmp.lt.u32.totalorder %s492_s16, %s487_s7 }
  0x1d   : > { %p496_p13 = scmp.lt.u32.totalorder %s487_s7, %s732_s30 }
  0x1e   : > { %p491_p6 = pneg %p490_p5  ;;  %p495_p10 = por %p494_p7, %p493_p4 }
  0x20   : > { %p497_p12 = por %p496_p13, %p495_p10 }
  0x22   : > { %p498_p1 = pnand %p497_p12, %p491_p6 }
  0x24   : > { %501 = shalt.err (!%p498_p1)
}
  0x25   : > { %s502_s20 = scalar_lea.vmem %s736_s4, 256  ;;  %s635_s28 = smov [#allocation2]  }
  0x26   : > { %p503_p2 = scmp.ne.s32.totalorder %s736_s4, %s502_s20  ;;  %s507_s29 = sshll.u32 %s635_s28, 4  ;;  %s508_s29 = int_to_ptr.vmem [resolvable:$false] %s507_s29 }
  0x27   : > { %s509_s3 = scalar_lea.vmem %s508_s29, 512  ;;  %p510_p9 = scmp.lt.s32.totalorder %s736_s4, %s508_s29 }
  0x28   : > { %p505_p5 = pnand %p503_p2, %p489_p3  ;;  %p511_p4 = scmp.lt.s32.totalorder %s509_s3, %s502_s20 }
  0x2a   : > { %p506_p11 = pneg %p505_p5  ;;  %p512_p7 = por %p511_p4, %p510_p9 }
  0x2c   : > { %p513_p10 = pnand %p512_p7, %p506_p11 }
  0x2e   : > { %516 = shalt.err (!%p513_p10)
}
  0x2f   : > { %s636_s7 = smov 128   ;;  %s637_s8 = smov 8  }
  0x30   : > { %420 = dma.hbm_to_vmem [thread:$0]  (!%p740_p0), %s732_s30, 256, %s736_s4, %s134_s6, %s636_s7, %s636_s7, %s637_s8  }
  0x31   : > { %p177_p9 = scmp.lt.s32.totalorder %s633_s14, 3  ;;  %s782_s18 = scalar_lea.hbm %s920_s1, %s407_s27 }
  0x32   : > { %p929_p11 = scmp.ge.s32.totalorder %s633_s14, 1  ;;  %s160_s20 = scalar_lea.vmem [#allocation5], %s391_s26 }
  0x33   : > { %s169_s28 = sshll.u32 %s160_s20, 4  ;;  %s157_s30 = scalar_lea.sflag [#allocation6], %s723_s25  ;;  %s792_s28 = int_to_ptr.vmem [resolvable:$true] %s169_s28 }
  0x34   : > { %p786_p12 = pnand %p929_p11, %p177_p9  ;;  %s517_s4 = scalar_lea.hbm %s782_s18, 256 }
  0x35   : > { %p518_p1 = scmp.ne.s32.totalorder %s782_s18, %s517_s4  ;;  %s522_s29 = scalar_lea.hbm %s920_s1, 2048 }
  0x36   : > { %p523_p2 = scmp.lt.u32.totalorder %s782_s18, %s920_s1  ;;  %p524_p5 = scmp.lt.u32.totalorder %s522_s29, %s517_s4 }
  0x37   : > { %p520_p6 = pnand %p518_p1, %p489_p3  ;;  %p526_p7 = scmp.lt.u32.totalorder %s517_s4, %s782_s18 }
  0x38   : > { %p525_p4 = por %p524_p5, %p523_p2 }
  0x39   : > { %p521_p13 = pneg %p520_p6 }
  0x3a   : > { %p527_p10 = por %p526_p7, %p525_p4 }
  0x3c   : > { %p528_p9 = pnand %p527_p10, %p521_p13 }
  0x3e   : > { %531 = shalt.err (!%p528_p9)
}
  0x3f   : > { %s532_s26 = scalar_lea.vmem %s792_s28, 256  ;;  %s638_s16 = smov [#allocation5]  }
  0x40   : > { %p533_p11 = scmp.ne.s32.totalorder %s792_s28, %s532_s26  ;;  %s537_s20 = sshll.u32 %s638_s16, 4  ;;  %s538_s20 = int_to_ptr.vmem [resolvable:$false] %s537_s20 }
  0x41   : > { %s539_s27 = scalar_lea.vmem %s538_s20, 512  ;;  %p540_p8 = scmp.lt.s32.totalorder %s792_s28, %s538_s20 }
  0x42   : > { %p535_p1 = pnand %p533_p11, %p489_p3  ;;  %p541_p2 = scmp.lt.s32.totalorder %s539_s27, %s532_s26 }
  0x44   : > { %p536_p6 = pneg %p535_p1  ;;  %p542_p5 = por %p541_p2, %p540_p8 }
  0x46   : > { %p543_p4 = pnand %p542_p5, %p536_p6 }
  0x48   : > { %546 = shalt.err (!%p543_p4)
}
  0x49   : > { %423 = dma.hbm_to_vmem [thread:$0]  (!%p740_p0), %s782_s18, 256, %s792_s28, %s157_s30, %s636_s7, %s636_s7, %s637_s8  }
  0x4a   : > { %181 = sbr.rel (%p786_p12) target bundleno = 121 (0x79), region = 28  ;;  %s826_s4 = sand.u32 (!%p786_p12), 1, %s617_s10  }
  0x4b   : > { %s398_s6 = sshll.u32 (!%p786_p12), %s826_s4, 4  ;;  %s184_s29 = scalar_lea.sflag (!%p786_p12), [#allocation3], %s826_s4 }
  0x4c   : > { %s187_s5 = scalar_lea.vmem (!%p786_p12), [#allocation2], %s398_s6  ;;  %p931_p8 = scmp.ne.s32.totalorder (!%p786_p12), %s925_s21, 0 }
  0x51   : > { %600 = dma.done.wait (%p931_p8), %s184_s29, 256  }
  0x52   : > { %602 = vsyncadd (%p931_p8), %s184_s29, 4294967040  ;;  %s193_s25 = scalar_lea.sflag [#allocation6], %s826_s4  ;;  %s196_s7 = scalar_lea.vmem [#allocation5], %s398_s6 }
  0x53   : > { %604 = dma.done.wait (%p931_p8), %s193_s25, 256  }
  0x54   : > { %606 = vsyncadd (%p931_p8), %s193_s25, 4294967040  ;;  %s409_s8 = smul.u32 24, %s826_s4  ;;  %vm228_vm0 = vcmask 130048   ;;  %v639_v0 = vmov 0.0   ;;  %v232_v1 = vld [vmem:[%s187_s5] sm:$0xff]  ;;  %v233_v2 = vld [vmem:[%s187_s5 + $0x8] sm:$0xff] }
  0x55   : > { %v234_v3 = vld [vmem:[%s196_s7] sm:$0xff]  ;;  %v235_v4 = vld [vmem:[%s196_s7 + $0x8] sm:$0xff]  ;;  %v236_v5 = vmul.f32 0.5, %v232_v1  ;;  %v237_v6 = vmul.f32 0.5, %v233_v2  ;;  %s410_s21 = smul.u32 384, %s625_s12  ;;  %s264_s12 = scalar_lea.sflag [#allocation4], %s826_s4 }
  0x56   : > { %s840_s18 = scalar_lea.vmem [#allocation7], %s409_s8  ;;  %v258_v7 = vsel %vm228_vm0, %v234_v3, 0.0  ;;  %v259_v8 = vsel %vm228_vm0, %v235_v4, 0.0  ;;  %p932_p3 = scmp.ne.s32.totalorder %s926_s22, 0 }
  0x57   : > { %229 = vst.msk [vmem:[%s840_s18] sm:$0xff] %vm228_vm0, %v639_v0  ;;  %230 = vst.msk [vmem:[%s840_s18 + $0x8] sm:$0xff] %vm228_vm0, %v639_v0  ;;  %483 = vtanh.f32 %v236_v5  ;;  %v260_v10 = vadd.f32 %v259_v8, %v258_v7  ;;  %s277_s19 = sshll.u32 %s840_s18, 4  ;;  %s866_s3 = scalar_lea.hbm %s921_s2, %s410_s21  ;;  %s868_s19 = int_to_ptr.vmem [resolvable:$true] %s277_s19 }
  0x58   : > { %231 = vst.msk [vmem:[%s840_s18 + $0x10] sm:$0xff] %vm228_vm0, %v639_v0  ;;  %485 = vtanh.f32 %v237_v6  ;;  %s547_s15 = scalar_lea.vmem %s868_s19, 384  ;;  %s640_s26 = smov [#allocation7]  }
  0x59   : > { %p548_p0 = scmp.ne.s32.totalorder %s868_s19, %s547_s15  ;;  %s551_s16 = sshll.u32 %s640_s26, 4  ;;  %s552_s16 = int_to_ptr.vmem [resolvable:$false] %s551_s16 }
  0x5a   : > { %s553_s20 = scalar_lea.vmem %s552_s16, 768  ;;  %p554_p7 = scmp.lt.s32.totalorder %s868_s19, %s552_s16 }
  0x5b   : > { %p549_p12 = pnand %p548_p0, %p932_p3  ;;  %p555_p10 = scmp.lt.s32.totalorder %s553_s20, %s547_s15 }
  0x5d   : > { %p550_p13 = pneg %p549_p12  ;;  %p556_p9 = por %p555_p10, %p554_p7 }
  0x5e   : > { %v400_v17 = vld [vmem:[%s840_s18 + $0x8] sm:$0xff]  ;;  %v240_v21 = vld [vmem:[%s840_s18] sm:$0xff] }
  0x5f   : > { %v402_v9 = vld [vmem:[%s840_s18 + $0x10] sm:$0xff]  ;;  %p557_p11 = pnand %p556_p9, %p550_p13 }
  0x60   : > { %v261_v11 = vadd.f32 %v402_v9, %v260_v10 }
  0x61   : > { %v484_v12 = vpop.eup %483 }
  0x62   : > { %403 = vst.msk [vmem:[%s840_s18 + $0x10] sm:$0xff] %vm228_vm0, %v261_v11  ;;  %v486_v13 = vpop.eup %485  ;;  %v241_v14 = vmul.f32 %v484_v12, %v234_v3  ;;  %v251_v15 = vsel %vm228_vm0, %v484_v12, 0.0 }
  0x63   : > { %v242_v16 = vmul.f32 %v486_v13, %v235_v4  ;;  %v252_v18 = vsel %vm228_vm0, %v486_v13, 0.0 }
  0x64   : > { %v244_v19 = vsel %vm228_vm0, %v241_v14, 0.0  ;;  %v253_v20 = vadd.f32 %v252_v18, %v251_v15 }
  0x65   : > { %v245_v22 = vsel %vm228_vm0, %v242_v16, 0.0 }
  0x66   : > { %v246_v23 = vadd.f32 %v245_v22, %v244_v19  ;;  %v254_v24 = vadd.f32 %v400_v17, %v253_v20 }
  0x68   : > { %v247_v25 = vadd.f32 %v246_v23, %v240_v21  ;;  %401 = vst.msk [vmem:[%s840_s18 + $0x8] sm:$0xff] %vm228_vm0, %v254_v24 }
  0x6a   : > { %248 = vst.msk [vmem:[%s840_s18] sm:$0xff] %vm228_vm0, %v247_v25 }
  0x6b   : > { %560 = shalt.err (!%p557_p11)
}
  0x6c   : > { %s561_s27 = scalar_lea.hbm %s866_s3, 384  ;;  %s565_s5 = scalar_lea.hbm %s921_s2, 768 }
  0x6d   : > { %p562_p1 = scmp.ne.s32.totalorder %s866_s3, %s561_s27  ;;  %p566_p5 = scmp.lt.u32.totalorder %s866_s3, %s921_s2 }
  0x6e   : > { %p567_p4 = scmp.lt.u32.totalorder %s565_s5, %s561_s27  ;;  %p569_p0 = scmp.lt.u32.totalorder %s561_s27, %s866_s3 }
  0x6f   : > { %p563_p6 = pnand %p562_p1, %p932_p3 }
  0x70   : > { %p568_p8 = por %p567_p4, %p566_p5 }
  0x71   : > { %p564_p2 = pneg %p563_p6 }
  0x72   : > { %p570_p12 = por %p569_p0, %p568_p8 }
  0x74   : > { %p571_p13 = pnand %p570_p12, %p564_p2 }
  0x76   : > { %574 = shalt.err (!%p571_p13)
}
  0x77   : > { %s641_s8 = smov 128   ;;  %s642_s18 = smov 8  }
  0x78   : > { %415 = dma.vmem_to_hbm [thread:$0]  (%p932_p3), %s868_s19, 384, %s866_s3, %s264_s12, %s641_s8, %s641_s8, %s642_s18  }
  0x79 PF: > { %s292_s21 = sand.u32 1, %s613_s9   ;;  %p933_p7 = scmp.ne.s32.totalorder %s927_s24, 0 }
  0x7a   : > { %p934_p10 = scmp.ge.s32.totalorder %s633_s14, 2  ;;  %s293_s28 = scalar_lea.sflag [#allocation4], %s292_s21 }
  0x7c   : > { %p425_p9 = pnand %p934_p10, %p933_p7 }
  0x7e   : > { %608 = dma.done.wait (!%p425_p9), %s293_s28, 384  }
  0x7f   : > { %610 = vsyncadd (!%p425_p9), %s293_s28, 4294966912  ;;  %s21_s14 = sadd.s32 1, %s633_s14   ;;  %s935_s9 = smov %s617_s10 }
  0x80   : > { %p18_p11 = scmp.ge.s32.totalorder %s21_s14, 4   ;;  %s936_s10 = smov %s621_s11 }
  0x81   : > { %s937_s11 = smov %s714_s23  ;;  %s938_s12 = smov %s629_s13 }
  0x82   : > { %s939_s13 = smov %s941_s17  ;;  %20 = sbr.rel (!%p18_p11) target bundleno = 8 (0x8), region = 92 }
  0x89   :  { %298 = vsyncpa [#allocation3], 1 }
  0x8a   :  { %300 = vsyncpa [#allocation3 + $0x1], 1 }
  0x8b   :  { %301 = vsyncpa [#allocation6], 1 }
  0x8c   :  { %303 = vsyncpa [#allocation6 + $0x1], 1 }
  0x8d   :  { %304 = vsyncpa [#allocation4], 1 }
  0x8e   :  { %306 = vsyncpa [#allocation4 + $0x1], 1 }

</bundles_post_ra>
